<compile_context>
chip_gen: v6e
topology: v6e:2x2x1
jax: 0.10.0
libtpu: 0.0.40
codegen_flags: <defaults>
</compile_context>

<pallas_src>
import jax
import jax.numpy as jnp
from jax.experimental import pallas as pl
from jax.experimental.pallas import tpu as pltpu

LANE = 128
SUBLANE = 8


def _round_up(x, m):
    return (x + m - 1) // m * m


def _vmem_limit_bytes():
    """Generation-aware VMEM budget: ~75% of physical, capped at 100 MiB."""
    cap = None
    try:
        cap = int(pltpu.get_tpu_info().vmem_capacity_bytes)
    except Exception:
        cap = None
    if not cap:
        kind = ""
        try:
            kind = jax.devices()[0].device_kind.lower()
        except Exception:
            pass
        cap = 64 * 1024 * 1024 if "v7" in kind else 128 * 1024 * 1024
    return min(cap * 3 // 4, 100 * 1024 * 1024)


def _pad_cast(a, shape, dtype):
    """Cast (and zero-pad, only if needed) a 2-D array to `shape`/`dtype`."""
    a = a.astype(dtype)
    if a.shape == tuple(shape):
        return a
    return jnp.zeros(shape, dtype).at[: a.shape[0], : a.shape[1]].set(a)


# --------------------------------------------------------------------------- #
# Kernels
# --------------------------------------------------------------------------- #
def _snet_resident_kernel(x_ref, w1_ref, b1_ref, w2_ref, b2_ref, o_ref):
    # x may arrive as f32 (zero-copy fast path) or bf16 (padded path).
    x = x_ref[...].astype(jnp.bfloat16)
    h = jnp.dot(x, w1_ref[...], preferred_element_type=jnp.float32)
    h = h + b1_ref[...]                       # bias in f32
    h = jnp.where(h > 0, h, 0.01 * h)          # LeakyReLU (negative_slope=0.01)
    y = jnp.dot(h.astype(jnp.bfloat16), w2_ref[...],
                preferred_element_type=jnp.float32)
    y = y + b2_ref[...]
    o_ref[...] = jnp.clip(y, -1.0, 1.0).astype(o_ref.dtype)   # torch.clamp(x,-1,1)


def _snet_ktiled_kernel(x_ref, w1_ref, b1_ref, w2_ref, b2_ref, o_ref, acc_ref):
    # Fallback for large dim_middle: accumulate y over dim_middle chunks.
    k = pl.program_id(1)

    @pl.when(k == 0)
    def _():
        acc_ref[...] = jnp.zeros_like(acc_ref)

    x = x_ref[...].astype(jnp.bfloat16)
    h = jnp.dot(x, w1_ref[...], preferred_element_type=jnp.float32)
    h = h + b1_ref[...]
    h = jnp.where(h > 0, h, 0.01 * h)
    acc_ref[...] += jnp.dot(h.astype(jnp.bfloat16), w2_ref[...],
                            preferred_element_type=jnp.float32)

    @pl.when(k == pl.num_programs(1) - 1)
    def _():
        y = acc_ref[...] + b2_ref[...]
        o_ref[...] = jnp.clip(y, -1.0, 1.0).astype(o_ref.dtype)


# --------------------------------------------------------------------------- #
# Wrapper
# --------------------------------------------------------------------------- #
def snet_forward(x, w1, b1, w2, b2, *, block_b=1024, block_dmid=512,
                 out_dtype=jnp.float32, force_tiled=False):
    """x: (B, Din) f32. Weights pre-transposed: w1 (Din, Dmid), w2 (Dmid, Din)."""
    B, Din = x.shape
    assert w1.shape[0] == Din and w2.shape[1] == Din and w1.shape[1] == w2.shape[0]
    Dmid = w1.shape[1]
    b1 = jnp.reshape(b1, (1, -1)).astype(jnp.float32)
    b2 = jnp.reshape(b2, (1, -1)).astype(jnp.float32)

    # Lane-dense padding targets for the feature dims.
    din_p = _round_up(Din, LANE)
    dmid_p = _round_up(Dmid, LANE)

    vmem_budget = _vmem_limit_bytes()
    out_elt = jnp.dtype(out_dtype).itemsize
    # bf16 weights + f32 biases, single-buffered (pl.Buffered(1)).
    weight_bytes = 2 * din_p * dmid_p * 2 + (din_p + dmid_p) * 4
    # Per batch row: double-buffered x (worst-case f32) + double-buffered out
    # + one f32 accumulator row (only the K-tiled path uses it; counted as headroom).
    per_row_bytes = din_p * (2 * 4 + 2 * out_elt + 4)

    use_tiled = force_tiled or (
        weight_bytes + SUBLANE * per_row_bytes > int(0.85 * vmem_budget))

    if use_tiled:
        # Largest multiple of 128 that divides dmid_p and is <= block_dmid.
        target = min(_round_up(block_dmid, LANE), dmid_p)
        dmid_tile = LANE
        for cand in range(target, 0, -LANE):
            if dmid_p % cand == 0:
                dmid_tile = cand
                break
        # Double-buffered per-step weight chunks + resident b2.
        reserved = 2 * (2 * din_p * dmid_tile * 2 + dmid_tile * 4) + din_p * 4
    else:
        dmid_tile = dmid_p
        reserved = weight_bytes

    # Batch tile: multiple of 8 sublanes, sized from the remaining VMEM budget.
    max_rows = max(SUBLANE,
                   ((int(0.85 * vmem_budget) - reserved) // max(per_row_bytes, 1))
                   // SUBLANE * SUBLANE)
    b_tile = max(SUBLANE, min(_round_up(block_b, SUBLANE),
                              _round_up(B, SUBLANE), max_rows))
    b_pad = _round_up(B, b_tile)

    # Fast path: no wrapper pad/cast of x when shapes are already friendly.
    if Din == din_p and B == b_pad:
        xk = x                                   # f32, cast to bf16 inside the kernel
    else:
        xk = _pad_cast(x, (b_pad, din_p), jnp.bfloat16)   # one small extra pass

    # Weights / biases (small; amortized over the whole batch).
    w1p = _pad_cast(w1, (din_p, dmid_p), jnp.bfloat16)
    b1p = _pad_cast(b1, (1, dmid_p), jnp.float32)
    w2p = _pad_cast(w2, (dmid_p, din_p), jnp.bfloat16)
    b2p = _pad_cast(b2, (1, din_p), jnp.float32)

    x_elt = jnp.dtype(xk.dtype).itemsize
    cost = pl.CostEstimate(
        flops=4 * b_pad * din_p * dmid_p,        # two matmuls, 2*M*N*K each
        transcendentals=0,
        bytes_accessed=b_pad * din_p * (x_elt + out_elt) + weight_bytes,
    )

    if not use_tiled:
        # Weights fully VMEM-resident, batch streamed over a 1-D parallel grid.
        out = pl.pallas_call(
            _snet_resident_kernel,
            out_shape=jax.ShapeDtypeStruct((b_pad, din_p), out_dtype),
            grid=(b_pad // b_tile,),
            in_specs=[
                pl.BlockSpec((b_tile, din_p), lambda i: (i, 0)),           # x (streamed)
                pl.BlockSpec((din_p, dmid_p), lambda i: (0, 0),
                             pipeline_mode=pl.Buffered(1)),                # W1 resident
                pl.BlockSpec((1, dmid_p), lambda i: (0, 0),
                             pipeline_mode=pl.Buffered(1)),                # b1 resident
                pl.BlockSpec((dmid_p, din_p), lambda i: (0, 0),
                             pipeline_mode=pl.Buffered(1)),                # W2 resident
                pl.BlockSpec((1, din_p), lambda i: (0, 0),
                             pipeline_mode=pl.Buffered(1)),                # b2 resident
            ],
            out_specs=pl.BlockSpec((b_tile, din_p), lambda i: (i, 0)),
            compiler_params=pltpu.CompilerParams(
                dimension_semantics=("parallel",),
                vmem_limit_bytes=vmem_budget),
            cost_estimate=cost,
        )(xk, w1p, b1p, w2p, b2p)
    else:
        # Large dim_middle: tile the hidden dim, accumulate y in an f32 scratch.
        # TODO(synk): also tile din_p for extremely large dim_in (output-N tiling).
        out = pl.pallas_call(
            _snet_ktiled_kernel,
            out_shape=jax.ShapeDtypeStruct((b_pad, din_p), out_dtype),
            grid=(b_pad // b_tile, dmid_p // dmid_tile),
            in_specs=[
                pl.BlockSpec((b_tile, din_p), lambda i, k: (i, 0)),        # x
                pl.BlockSpec((din_p, dmid_tile), lambda i, k: (0, k)),     # W1 chunk
                pl.BlockSpec((1, dmid_tile), lambda i, k: (0, k)),         # b1 chunk
                pl.BlockSpec((dmid_tile, din_p), lambda i, k: (k, 0)),     # W2 chunk
                pl.BlockSpec((1, din_p), lambda i, k: (0, 0),
                             pipeline_mode=pl.Buffered(1)),                # b2 resident
            ],
            out_specs=pl.BlockSpec((b_tile, din_p), lambda i, k: (i, 0)),
            scratch_shapes=[pltpu.VMEM((b_tile, din_p), jnp.float32)],
            compiler_params=pltpu.CompilerParams(
                dimension_semantics=("parallel", "arbitrary"),
                vmem_limit_bytes=vmem_budget),
            cost_estimate=cost,
        )(xk, w1p, b1p, w2p, b2p)

    if (b_pad, din_p) != (B, Din):
        out = out[:B, :Din]
    return out


# --------------------------------------------------------------------------- #
# Reference / init / test
# --------------------------------------------------------------------------- #
def init_snet_params(key, dim_in, dim_middle):
    """Deterministic init matching nn.Linear shapes (PyTorch-style uniform)."""
    k1, k2, k3, k4 = jax.random.split(key, 4)
    bound1 = 1.0 / jnp.sqrt(dim_in)
    bound2 = 1.0 / jnp.sqrt(dim_middle)
    # nn.Linear(dim_in, dim_middle): weight (dim_middle, dim_in) -> stored transposed
    w1 = jax.random.uniform(k1, (dim_in, dim_middle), jnp.float32, -bound1, bound1)
    b1 = jax.random.uniform(k2, (1, dim_middle), jnp.float32, -bound1, bound1)
    # nn.Linear(dim_middle, dim_in): weight (dim_in, dim_middle) -> stored transposed
    w2 = jax.random.uniform(k3, (dim_middle, dim_in), jnp.float32, -bound2, bound2)
    b2 = jax.random.uniform(k4, (1, dim_in), jnp.float32, -bound2, bound2)
    return w1, b1, w2, b2


def snet_reference(x, w1, b1, w2, b2):
    h = x @ w1 + b1
    h = jnp.where(h > 0, h, 0.01 * h)
    y = h @ w2 + b2
    return jnp.clip(y, -1.0, 1.0)


def _check(out, ref, shape):
    assert out.shape == shape, (out.shape, shape)
    err = float(jnp.max(jnp.abs(out - ref)))
    assert jnp.allclose(out, ref, atol=3e-2, rtol=2e-2), err


if __name__ == "__main__":
    key = jax.random.PRNGKey(0)
    kx1, kp1, kx2, kp2, kx3, kp3 = jax.random.split(key, 6)

    # Case 1: small, lane-unfriendly dims -> padded path, weights resident.
    B, Din, Dmid = 8, 32, 64
    x = jax.random.normal(kx1, (B, Din), jnp.float32)
    w1, b1, w2, b2 = init_snet_params(kp1, Din, Dmid)
    out = jax.block_until_ready(snet_forward(x, w1, b1, w2, b2))
    _check(out, snet_reference(x, w1, b1, w2, b2), (B, Din))

    # Case 2: (8,128)-friendly dims -> zero-copy fast path (no wrapper pad/cast/slice).
    B, Din, Dmid = 16, 128, 256
    x = jax.random.normal(kx2, (B, Din), jnp.float32)
    w1, b1, w2, b2 = init_snet_params(kp2, Din, Dmid)
    out = jax.block_until_ready(snet_forward(x, w1, b1, w2, b2))
    _check(out, snet_reference(x, w1, b1, w2, b2), (B, Din))

    # Case 3: force the K-tiled fallback (dim_middle split into 2 chunks).
    B, Din, Dmid = 8, 32, 200
    x = jax.random.normal(kx3, (B, Din), jnp.float32)
    w1, b1, w2, b2 = init_snet_params(kp3, Din, Dmid)
    out = jax.block_until_ready(
        snet_forward(x, w1, b1, w2, b2, block_dmid=128, force_tiled=True))
    _check(out, snet_reference(x, w1, b1, w2, b2), (B, Din))

    print("KERNEL_OK")
</pallas_src>

<mosaic_0001>
module attributes {stable_mosaic.version = 11 : i64} {
  func.func @_snet_resident_kernel(%arg0: i32, %arg1: memref<8x128xbf16, #tpu.memory_space<vmem>>, %arg2: memref<128x128xbf16, #tpu.memory_space<vmem>>, %arg3: memref<1x128xf32, #tpu.memory_space<vmem>>, %arg4: memref<128x128xbf16, #tpu.memory_space<vmem>>, %arg5: memref<1x128xf32, #tpu.memory_space<vmem>>, %arg6: memref<8x128xf32, #tpu.memory_space<vmem>>) attributes {dimension_semantics = [#tpu.dimension_semantics<parallel>], iteration_bounds = array<i64: 1>, scalar_prefetch = 0 : i64, scratch_operands = 0 : i64, tpu.core_type = #tpu.core_type<tc>, window_params = [{transform_indices = @transform_0, window_bounds = array<i64: 8, 128>}, {pipeline_mode = #tpu.pipeline_mode<synchronous>, transform_indices = @transform_1, window_bounds = array<i64: 128, 128>}, {pipeline_mode = #tpu.pipeline_mode<synchronous>, transform_indices = @transform_2, window_bounds = array<i64: 1, 128>}, {pipeline_mode = #tpu.pipeline_mode<synchronous>, transform_indices = @transform_3, window_bounds = array<i64: 128, 128>}, {pipeline_mode = #tpu.pipeline_mode<synchronous>, transform_indices = @transform_4, window_bounds = array<i64: 1, 128>}, {transform_indices = @transform_5, window_bounds = array<i64: 8, 128>}]} {
    %c0 = arith.constant 0 : index
    %c0_0 = arith.constant 0 : index
    %0 = vector.load %arg1[%c0, %c0_0] : memref<8x128xbf16, #tpu.memory_space<vmem>>, vector<8x128xbf16>
    %c0_1 = arith.constant 0 : index
    %c0_2 = arith.constant 0 : index
    %1 = vector.load %arg2[%c0_1, %c0_2] : memref<128x128xbf16, #tpu.memory_space<vmem>>, vector<128x128xbf16>
    %cst = arith.constant dense<0.000000e+00> : vector<8x128xf32>
    %2 = tpu.matmul %0, %1, %cst {dimension_numbers = #tpu.dot_dimension_numbers<[1], [0], [0], [1], [0, 0, 1, 1], [], []>} : vector<8x128xbf16>, vector<128x128xbf16>, vector<8x128xf32> -> vector<8x128xf32>
    %c0_3 = arith.constant 0 : index
    %c0_4 = arith.constant 0 : index
    %3 = vector.load %arg3[%c0_3, %c0_4] : memref<1x128xf32, #tpu.memory_space<vmem>>, vector<1x128xf32>
    %4 = vector.broadcast %3 : vector<1x128xf32> to vector<8x128xf32>
    %5 = arith.addf %2, %4 : vector<8x128xf32>
    %cst_5 = arith.constant 0.000000e+00 : f32
    %6 = vector.broadcast %cst_5 : f32 to vector<8x128xf32>
    %7 = arith.cmpf ogt, %5, %6 : vector<8x128xf32>
    %cst_6 = arith.constant 0.00999999977 : f32
    %8 = vector.broadcast %cst_6 : f32 to vector<8x128xf32>
    %9 = arith.mulf %8, %5 : vector<8x128xf32>
    %10 = arith.select %7, %5, %9 : vector<8x128xi1>, vector<8x128xf32>
    %11 = arith.truncf %10 : vector<8x128xf32> to vector<8x128xbf16>
    %c0_7 = arith.constant 0 : index
    %c0_8 = arith.constant 0 : index
    %12 = vector.load %arg4[%c0_7, %c0_8] : memref<128x128xbf16, #tpu.memory_space<vmem>>, vector<128x128xbf16>
    %cst_9 = arith.constant dense<0.000000e+00> : vector<8x128xf32>
    %13 = tpu.matmul %11, %12, %cst_9 {dimension_numbers = #tpu.dot_dimension_numbers<[1], [0], [0], [1], [0, 0, 1, 1], [], []>} : vector<8x128xbf16>, vector<128x128xbf16>, vector<8x128xf32> -> vector<8x128xf32>
    %c0_10 = arith.constant 0 : index
    %c0_11 = arith.constant 0 : index
    %14 = vector.load %arg5[%c0_10, %c0_11] : memref<1x128xf32, #tpu.memory_space<vmem>>, vector<1x128xf32>
    %15 = vector.broadcast %14 : vector<1x128xf32> to vector<8x128xf32>
    %16 = arith.addf %13, %15 : vector<8x128xf32>
    %cst_12 = arith.constant -1.000000e+00 : f32
    %cst_13 = arith.constant 1.000000e+00 : f32
    %17 = vector.broadcast %cst_12 : f32 to vector<8x128xf32>
    %18 = arith.maximumf %17, %16 : vector<8x128xf32>
    %19 = vector.broadcast %cst_13 : f32 to vector<8x128xf32>
    %20 = arith.minimumf %19, %18 : vector<8x128xf32>
    %c0_14 = arith.constant 0 : index
    %c0_15 = arith.constant 0 : index
    %21 = vector.load %arg6[%c0_14, %c0_15] : memref<8x128xf32, #tpu.memory_space<vmem>>, vector<8x128xf32>
    tpu.vector_store %arg6[%c0_14, %c0_15], %20 {strides = array<i32>} : memref<8x128xf32, #tpu.memory_space<vmem>>, vector<8x128xf32>,
    return
  }
  func.func @transform_0(%arg0: i32) -> (i32, i32) {
    %c0_i32 = arith.constant 0 : i32
    %c0_i32_0 = arith.constant 0 : i32
    return %arg0, %c0_i32 : i32, i32
  }
  func.func @transform_1(%arg0: i32) -> (i32, i32) {
    %c0_i32 = arith.constant 0 : i32
    %c0_i32_0 = arith.constant 0 : i32
    %c0_i32_1 = arith.constant 0 : i32
    return %c0_i32, %c0_i32_0 : i32, i32
  }
  func.func @transform_2(%arg0: i32) -> (i32, i32) {
    %c0_i32 = arith.constant 0 : i32
    %c0_i32_0 = arith.constant 0 : i32
    %c0_i32_1 = arith.constant 0 : i32
    return %c0_i32, %c0_i32_0 : i32, i32
  }
  func.func @transform_3(%arg0: i32) -> (i32, i32) {
    %c0_i32 = arith.constant 0 : i32
    %c0_i32_0 = arith.constant 0 : i32
    %c0_i32_1 = arith.constant 0 : i32
    return %c0_i32, %c0_i32_0 : i32, i32
  }
  func.func @transform_4(%arg0: i32) -> (i32, i32) {
    %c0_i32 = arith.constant 0 : i32
    %c0_i32_0 = arith.constant 0 : i32
    %c0_i32_1 = arith.constant 0 : i32
    return %c0_i32, %c0_i32_0 : i32, i32
  }
  func.func @transform_5(%arg0: i32) -> (i32, i32) {
    %c0_i32 = arith.constant 0 : i32
    %c0_i32_0 = arith.constant 0 : i32
    return %arg0, %c0_i32 : i32, i32
  }
}

</mosaic_0001>

<bundles_post_ra>
// kernel: tpu_custom_call.1
= control target key start
LH: loop header
LB: loop body
LE: loop exit
PB: predicated region body
PF: predicated region fallthrough
CT: control target
= control target key end

     0   :  { %10 = vsyncpa [#allocation3], 0  ;;  %s550_s0 = inlined_call_operand.hbm [shape: bf16[8,128], index: 0, kind: input, shape index: {}]   ;;  %s551_s1 = inlined_call_operand.hbm [shape: bf16[128,128], index: 1, kind: input, shape index: {}]   ;;  %s552_s2 = inlined_call_operand.vmem [shape: f32[1,128], index: 2, kind: input, shape index: {}]   ;;  %s553_s3 = inlined_call_operand.hbm [shape: bf16[128,128], index: 3, kind: input, shape index: {}]   ;;  %s554_s4 = inlined_call_operand.vmem [shape: f32[1,128], index: 4, kind: input, shape index: {}]   ;;  %s555_s5 = inlined_call_operand.hbm [shape: f32[8,128], index: 5, kind: output, shape index: {}]  }
   0x1   :  { %11 = vsyncpa [#allocation6], 0 }
   0x2   :  { %12 = vsyncpa [#allocation4], 0  ;;  %s494_s18 = smov [#allocation5]  }
   0x3   :  { %s28_s19 = sshll.u32 %s494_s18, 4  ;;  %s29_s19 = int_to_ptr.vmem [resolvable:$true] %s28_s19 }
   0x4   :  { %s416_s20 = scalar_lea.vmem %s29_s19, 1024  ;;  %p421_p1 = scmp.lt.s32.totalorder %s29_s19, %s29_s19 }
   0x5   :  { %p417_p0 = scmp.ne.s32.totalorder %s29_s19, %s416_s20  ;;  %p422_p2 = scmp.lt.s32.totalorder %s416_s20, %s416_s20 }
   0x7   :  { %p423_p3 = por %p422_p2, %p421_p1 }
   0x9   :  { %p424_p4 = pnand %p423_p3, %p417_p0 }
   0xb   :  { %427 = shalt.err (!%p424_p4)
}
   0xc   :  { %s495_s21 = smov 64   ;;  %s496_s22 = smov 4  }
   0xd   :  { %34 = dma.hbm_to_vmem [thread:$0]  %s551_s1, 1024, %s29_s19, [#allocation6], %s495_s21, %s495_s21, %s496_s22  }
   0xe   :  { %s497_s25 = smov [#allocation2]   ;;  %s498_s27 = smov [#allocation7]  }
   0xf   :  { %s19_s26 = sshll.u32 %s497_s25, 4  ;;  %s42_s28 = sshll.u32 %s498_s27, 4  ;;  %s20_s26 = int_to_ptr.vmem [resolvable:$true] %s19_s26  ;;  %s43_s28 = int_to_ptr.vmem [resolvable:$true] %s42_s28 }
  0x10   :  { %s436_s29 = scalar_lea.vmem %s20_s26, 64  ;;  %p441_p6 = scmp.lt.s32.totalorder %s20_s26, %s20_s26 }
  0x11   :  { %p437_p5 = scmp.ne.s32.totalorder %s20_s26, %s436_s29  ;;  %p442_p7 = scmp.lt.s32.totalorder %s436_s29, %s436_s29 }
  0x13   :  { %p443_p8 = por %p442_p7, %p441_p6 }
  0x15   :  { %p444_p9 = pnand %p443_p8, %p437_p5 }
  0x17   :  { %447 = shalt.err (!%p444_p9)
}
  0x18   :  { %22 = dma.hbm_to_vmem [thread:$0]  %s550_s0, 64, %s20_s26, [#allocation3]  }
  0x19   :  { %s456_s7 = scalar_lea.vmem %s43_s28, 1024  ;;  %p461_p11 = scmp.lt.s32.totalorder %s43_s28, %s43_s28 }
  0x1a   :  { %p457_p10 = scmp.ne.s32.totalorder %s43_s28, %s456_s7  ;;  %p462_p12 = scmp.lt.s32.totalorder %s456_s7, %s456_s7 }
  0x1c   :  { %p463_p13 = por %p462_p12, %p461_p11 }
  0x1e   :  { %p464_p0 = pnand %p463_p13, %p457_p10 }
  0x20   :  { %467 = shalt.err (!%p464_p0)
}
  0x21   :  { %48 = dma.hbm_to_vmem [thread:$0]  %s553_s3, 1024, %s43_s28, [#allocation6], %s495_s21, %s495_s21, %s496_s22  }
  0x22   :  { %488 = dma.done.wait [#allocation3], 64  }
  0x23   :  { %489 = vsyncadd [#allocation3], 4294967232 }
  0x24   :  { %490 = dma.done.wait [#allocation6], 2048  }
  0x25   :  { %491 = vsyncadd [#allocation6], 4294965248  ;;  %v499_v0 = vmov 0.0   ;;  %vm500_vm0 = vmmov 0   ;;  %v392_v1 = vld [vmem:[#allocation5 + $0x38] sm:$0xff]   ;;  %v393_v2 = vld [vmem:[#allocation5 + $0x30] sm:$0xff]  }
  0x26   :  { %344 = vmatprep.subr.bf16.mxu0 %v499_v0  ;;  %360 = vmatprep.mubr.msk.bf16.mxu0 %vm500_vm0, %v499_v0  ;;  %v394_v3 = vld [vmem:[#allocation5 + $0x28] sm:$0xff]   ;;  %v400_v4 = vld [vmem:[#allocation7 + $0x38] sm:$0xff]   ;;  %v395_v5 = vld [vmem:[#allocation5 + $0x20] sm:$0xff]   ;;  %s501_s11 = smov [#allocation8]  }
  0x27   :  { %364 = vmatprep.subr.bf16.mxu1 %v499_v0  ;;  %380 = vmatprep.mubr.msk.bf16.mxu1 %vm500_vm0, %v499_v0  ;;  %v401_v6 = vld [vmem:[#allocation7 + $0x30] sm:$0xff]   ;;  %v396_v7 = vld [vmem:[#allocation5 + $0x18] sm:$0xff]   ;;  %v402_v8 = vld [vmem:[#allocation7 + $0x28] sm:$0xff]   ;;  %s297_s12 = sshll.u32 %s501_s11, 4  ;;  %s298_s12 = int_to_ptr.vmem [resolvable:$true] %s297_s12 }
  0x28   :  { %345 = vmatpush3.bf16.msra.mxu0 %v392_v1  ;;  %365 = vmatpush3.bf16.msra.mxu1 %v400_v4  ;;  %v397_v9 = vld [vmem:[#allocation5 + $0x10] sm:$0xff]   ;;  %v403_v10 = vld [vmem:[#allocation7 + $0x20] sm:$0xff]   ;;  %v398_v11 = vld [vmem:[#allocation5 + $0x8] sm:$0xff]   ;;  %p473_p2 = scmp.lt.s32.totalorder %s298_s12, %s298_s12 }
  0x29   :  { %346 = vmatprep.subr.bf16.mxu0 %v499_v0  ;;  %366 = vmatprep.subr.bf16.mxu1 %v499_v0  ;;  %v404_v12 = vld [vmem:[#allocation7 + $0x18] sm:$0xff]   ;;  %v399_v13 = vld [vmem:[#allocation5] sm:$0xff]   ;;  %v405_v14 = vld [vmem:[#allocation7 + $0x10] sm:$0xff]  }
  0x2a   :  { %v61_v15 = vld [vmem:[#allocation2] sm:$0xf]  ;;  %v406_v16 = vld [vmem:[#allocation7 + $0x8] sm:$0xff]   ;;  %v407_v17 = vld [vmem:[#allocation7] sm:$0xff]  }
  0x2b   :  { %v307_v18 = vld [vmem:[%s552_s2] ss:$0 sm:$0xff]  ;;  %s468_s2 = scalar_lea.vmem %s298_s12, 128 }
  0x2c   :  { %347 = vmatpush3.bf16.msra.mxu0 %v393_v2  ;;  %367 = vmatpush3.bf16.msra.mxu1 %v401_v6  ;;  %v316_v27 = vld [vmem:[%s554_s4] ss:$0 sm:$0xff]  ;;  %p469_p1 = scmp.ne.s32.totalorder %s298_s12, %s468_s2  ;;  %p474_p3 = scmp.lt.s32.totalorder %s468_s2, %s468_s2 }
  0x2d   :  { %348 = vmatprep.subr.bf16.mxu0 %v499_v0  ;;  %368 = vmatprep.subr.bf16.mxu1 %v499_v0 }
  0x2e   :  { %p475_p4 = por %p474_p3, %p473_p2 }
  0x30   :  { %349 = vmatpush3.bf16.msra.mxu0 %v394_v3  ;;  %369 = vmatpush3.bf16.msra.mxu1 %v402_v8  ;;  %p476_p5 = pnand %p475_p4, %p469_p1 }
  0x31   :  { %350 = vmatprep.subr.bf16.mxu0 %v499_v0  ;;  %370 = vmatprep.subr.bf16.mxu1 %v499_v0 }
  0x34   :  { %351 = vmatpush3.bf16.msra.mxu0 %v395_v5  ;;  %371 = vmatpush3.bf16.msra.mxu1 %v403_v10 }
  0x35   :  { %352 = vmatprep.subr.bf16.mxu0 %v499_v0  ;;  %372 = vmatprep.subr.bf16.mxu1 %v499_v0 }
  0x38   :  { %353 = vmatpush3.bf16.msra.mxu0 %v396_v7  ;;  %373 = vmatpush3.bf16.msra.mxu1 %v404_v12 }
  0x39   :  { %354 = vmatprep.subr.bf16.mxu0 %v499_v0  ;;  %374 = vmatprep.subr.bf16.mxu1 %v499_v0 }
  0x3c   :  { %355 = vmatpush3.bf16.msra.mxu0 %v397_v9  ;;  %375 = vmatpush3.bf16.msra.mxu1 %v405_v14 }
  0x3d   :  { %356 = vmatprep.subr.bf16.mxu0 %v499_v0  ;;  %376 = vmatprep.subr.bf16.mxu1 %v499_v0 }
  0x40   :  { %357 = vmatpush3.bf16.msra.mxu0 %v398_v11  ;;  %377 = vmatpush3.bf16.msra.mxu1 %v406_v16 }
  0x41   :  { %358 = vmatprep.subr.bf16.mxu0 %v499_v0  ;;  %378 = vmatprep.subr.bf16.mxu1 %v499_v0 }
  0x44   :  { %359 = vmatpush3.bf16.msra.mxu0 %v399_v13  ;;  %379 = vmatpush3.bf16.msra.mxu1 %v407_v17 }
  0x47   :  { %361 = vmatmul.mubr.bf16.vlgmr.msra.gmra.mxu0 %v61_v15 }
 0x107   :  { %v167_v19 = vpop.f32.mrf.mxu0 }
 0x108   :  { %v168_v20 = vadd.f32 %v307_v18, %v167_v19 }
 0x109   :  { %v362_v21 = vpop.f32.mrf.mxu0 }
 0x10a   :  { %vm173_vm1 = vcmp.gt.f32.partialorder %v168_v20, 0.0  ;;  %v174_v22 = vmul.f32 0.01, %v168_v20 }
 0x10b   :  { %v170_v23 = vpop.f32.mrf.mxu0 }
 0x10c   :  { %v175_v24 = vsel %vm173_vm1, %v168_v20, %v174_v22 }
 0x10d   :  { %v363_v25 = vpop.f32.mrf.mxu0  ;;  %v176_v26 = vpack.c.bf16 %v175_v24, %v175_v24 }
 0x10f   :  { %381 = vmatmul.mubr.bf16.vlgmr.msra.gmra.mxu1 %v176_v26 }
 0x1cf   :  { %v282_v28 = vpop.f32.mrf.mxu1 }
 0x1d0   :  { %v283_v29 = vadd.f32 %v316_v27, %v282_v28 }
 0x1d1   :  { %v382_v30 = vpop.f32.mrf.mxu1 }
 0x1d2   :  { %v325_v31 = vclamps-f32 %v283_v29, 1.0 }
 0x1d3   :  { %v285_v32 = vpop.f32.mrf.mxu1 }
 0x1d4   :  { %290 = vst [vmem:[#allocation8] sm:$0xff] %v325_v31 }
 0x1d5   :  { %v383_v33 = vpop.f32.mrf.mxu1 }
 0x1d6   :  { %479 = shalt.err (!%p476_p5)
}
 0x1d7   :  { %300 = dma.vmem_to_hbm [thread:$0]  %s298_s12, 128, %s555_s5, [#allocation4]  }
 0x1d8   :  { %492 = dma.done.wait [#allocation4], 128  }
 0x1d9   :  { %493 = vsyncadd [#allocation4], 4294967168 }
 0x1da   :  { %304 = vsyncpa [#allocation3], 1 }
 0x1db   :  { %305 = vsyncpa [#allocation6], 1 }
 0x1dc   :  { %306 = vsyncpa [#allocation4], 1 }

</bundles_post_ra>
